<compile_context>
chip_gen: v6e
topology: v6e:2x2x1
jax: 0.10.0
libtpu: 0.0.40
codegen_flags: <defaults>
</compile_context>

<pallas_src>
import functools

import jax
import jax.numpy as jnp
from jax.experimental import pallas as pl
from jax.experimental.pallas import tpu as pltpu


NEG_SLOPE = 0.01  # torch.nn.LeakyReLU default


def _leaky_relu(v):
    # one vmul + vmax instead of compare + select
    return jnp.maximum(v, NEG_SLOPE * v)


def affine_coupling_kernel(x_ref, c_ref, w1x_ref, w1c_ref, b1_ref,
                           w2_ref, b2_ref, wo_ref, bo_ref,
                           z_ref, logdet_ref):
    """Transposed layout: features on sublanes, batch on lanes (lane-dense)."""
    in_dim = z_ref.shape[0]
    mm = w1x_ref.dtype                       # matmul dtype (bf16 recommended)

    x = x_ref[...]                           # (in_dim, tb), native dtype

    # Fused s/t MLP; coupling mask is already folded into w1x / wo / bo.
    h = jnp.dot(w1x_ref[...], x.astype(mm), preferred_element_type=jnp.float32)
    h = h + jnp.dot(w1c_ref[...], c_ref[...].astype(mm),
                    preferred_element_type=jnp.float32)
    h = _leaky_relu(h + b1_ref[...])                                  # (2H, tb)
    h = jnp.dot(w2_ref[...], h.astype(mm), preferred_element_type=jnp.float32)
    h = _leaky_relu(h + b2_ref[...])                                  # (2H, tb)
    st = jnp.dot(wo_ref[...], h.astype(mm), preferred_element_type=jnp.float32)
    st = st + bo_ref[...]                                             # (2*in_dim, tb)

    s = st[:in_dim, :]                       # == (s * mask)^T  (mask folded in)
    t = st[in_dim:, :]                       # == (t * mask)^T

    # TODO(synk): torch.isnan(exp_s).any() -> RuntimeError has no in-kernel
    # equivalent on TPU (no exceptions); NaNs simply propagate to the outputs.
    z_ref[...] = (x.astype(jnp.float32) * jnp.exp(s) + t).astype(z_ref.dtype)
    logdet_ref[...] = jnp.sum(s, axis=0, keepdims=True)   # (1, tb) lane-dense


def checkerboard_mask1d(width, reverse=False, dtype=jnp.float32):
    m = (jnp.arange(width, dtype=jnp.int32) % 2).astype(dtype)
    if reverse:
        m = 1.0 - m
    return m.reshape(1, width)


def make_params(key, in_dim, condition_dim, hidden_dim, dtype=jnp.float32):
    """Deterministic synthetic nn.Linear-style parameters, stored (in, out)."""
    keys = jax.random.split(key, 12)

    def lin(kw, kb, fan_in, fan_out):
        bound = 1.0 / jnp.sqrt(fan_in)
        w = jax.random.uniform(kw, (fan_in, fan_out), dtype, -bound, bound)
        b = jax.random.uniform(kb, (1, fan_out), dtype, -bound, bound)
        return w, b

    cat_dim = in_dim + condition_dim
    w1s, b1s = lin(keys[0], keys[1], cat_dim, hidden_dim)
    w2s, b2s = lin(keys[2], keys[3], hidden_dim, hidden_dim)
    wos, bos = lin(keys[4], keys[5], hidden_dim, in_dim)
    w1t, b1t = lin(keys[6], keys[7], cat_dim, hidden_dim)
    w2t, b2t = lin(keys[8], keys[9], hidden_dim, hidden_dim)
    wot, bot = lin(keys[10], keys[11], hidden_dim, in_dim)

    return dict(
        w1s_x=w1s[:in_dim], w1s_c=w1s[in_dim:], b1s=b1s,
        w2s=w2s, b2s=b2s, wos=wos, bos=bos,
        w1t_x=w1t[:in_dim], w1t_c=w1t[in_dim:], b1t=b1t,
        w2t=w2t, b2t=b2t, wot=wot, bot=bot,
    )


def pack_params(params, mask, matmul_dtype=jnp.bfloat16):
    """Fold the coupling mask into the (pre-transposed) weights and fuse s/t.

      w1x (2H, in_dim)     x-columns scaled by (1 - mask)   [x_fixed folded in]
      w1c (2H, cond_dim)
      w2  (2H, 2H)         block-diagonal [w2s^T, 0; 0, w2t^T]
      wo  (2*in_dim, 2H)   block-diagonal, output rows scaled by mask
      b1/b2/bo             (rows, 1) f32 columns (added after f32 accumulation)

    bf16 matmul weights are recommended on every generation (the MXU is
    bf16-native, incl. v5e); accumulation and the epilogue stay f32.
    Note: if hidden_dim is scaled up (>= ~128-256), un-fuse the block-diagonal
    w2/wo into per-branch matmuls to avoid 2x wasted MXU FLOPs / VMEM bytes.
    """
    in_dim = params["wos"].shape[1]
    hidden = params["w2s"].shape[0]
    m = mask.reshape(-1).astype(jnp.float32)              # (in_dim,)
    one_minus_m = 1.0 - m

    w1x = jnp.concatenate([params["w1s_x"].T, params["w1t_x"].T], axis=0)
    w1x = w1x * one_minus_m[None, :]                       # fold x_fixed = x*(1-m)
    w1c = jnp.concatenate([params["w1s_c"].T, params["w1t_c"].T], axis=0)
    b1 = jnp.concatenate([params["b1s"], params["b1t"]], axis=1).reshape(-1, 1)

    zh = jnp.zeros((hidden, hidden), jnp.float32)
    w2 = jnp.block([[params["w2s"].T, zh], [zh, params["w2t"].T]])     # (2H, 2H)
    b2 = jnp.concatenate([params["b2s"], params["b2t"]], axis=1).reshape(-1, 1)

    zo = jnp.zeros((in_dim, hidden), jnp.float32)
    wo = jnp.block([[params["wos"].T * m[:, None], zo],
                    [zo, params["wot"].T * m[:, None]]])   # fold s,t *= mask
    bo = jnp.concatenate([params["bos"] * m, params["bot"] * m],
                         axis=1).reshape(-1, 1)

    return dict(
        w1x=w1x.astype(matmul_dtype), w1c=w1c.astype(matmul_dtype),
        b1=b1.astype(jnp.float32),
        w2=w2.astype(matmul_dtype), b2=b2.astype(jnp.float32),
        wo=wo.astype(matmul_dtype), bo=bo.astype(jnp.float32),
    )


def _round_up(n, k):
    return ((n + k - 1) // k) * k


def _choose_batch_tile(B, block_b):
    """Lane-aligned batch tile: large enough to amortize per-step pipeline
    overhead, capped so the grid keeps >= 2 steps (v7x dual TensorCores)."""
    if B <= 128:
        return B                              # single full-array block
    tb = min(block_b, _round_up(pl.cdiv(B, 2), 128))
    return max(128, (tb // 128) * 128)


def _coupling_pallas(x_t, c_t, packed, block_b):
    in_dim, B = x_t.shape
    cond_dim = c_t.shape[0]
    two_h = packed["w2"].shape[0]
    out_rows = packed["wo"].shape[0]          # 2 * in_dim

    tb = _choose_batch_tile(B, block_b)
    grid = (pl.cdiv(B, tb),)

    batch = lambda i: (0, i)                  # tiled over batch lanes
    const = lambda i: (0, 0)                  # weights/biases: VMEM-resident

    z_t, logdet = pl.pallas_call(
        affine_coupling_kernel,
        out_shape=(
            jax.ShapeDtypeStruct((in_dim, B), x_t.dtype),
            jax.ShapeDtypeStruct((1, B), jnp.float32),
        ),
        grid=grid,
        in_specs=[
            # Activation streams, DMA'd in their native dtype.
            # (If a profile ever shows exposed DMA, add pipeline_mode=pl.Buffered(3).)
            pl.BlockSpec((in_dim, tb), batch),        # x^T
            pl.BlockSpec((cond_dim, tb), batch),      # c^T
            # Packed weights / biases (constant index_map -> fetched once).
            pl.BlockSpec((two_h, in_dim), const),     # w1x
            pl.BlockSpec((two_h, cond_dim), const),   # w1c
            pl.BlockSpec((two_h, 1), const),          # b1
            pl.BlockSpec((two_h, two_h), const),      # w2
            pl.BlockSpec((two_h, 1), const),          # b2
            pl.BlockSpec((out_rows, two_h), const),   # wo
            pl.BlockSpec((out_rows, 1), const),       # bo
        ],
        out_specs=(
            pl.BlockSpec((in_dim, tb), batch),        # z^T   (lane-dense)
            pl.BlockSpec((1, tb), batch),             # logdet (lane-dense)
        ),
        compiler_params=pltpu.CompilerParams(
            dimension_semantics=("parallel",),        # batch split across v7x TCs
            vmem_limit_bytes=32 * 1024 * 1024,        # << physical on all chips
        ),
    )(x_t, c_t, packed["w1x"], packed["w1c"], packed["b1"],
      packed["w2"], packed["b2"], packed["wo"], packed["bo"])
    return z_t, logdet


@functools.partial(jax.jit, static_argnames=("block_b",))
def affine_coupling_forward_t(x_t, c_t, packed, block_b=2048):
    """Native lane-dense API: x_t (in_dim, B), c_t (cond_dim, B).
    Returns z_t (in_dim, B), logdet (B,)."""
    z_t, ld = _coupling_pallas(x_t, c_t, packed, block_b)
    return z_t, jnp.squeeze(ld, axis=0)


@functools.partial(jax.jit, static_argnames=("block_b",))
def affine_coupling_forward(x, c, packed, block_b=2048):
    """PyTorch-layout convenience API: x (B, in_dim), c (B, cond_dim).
    The transposes are layout plumbing only; keep activations transposed
    upstream (affine_coupling_forward_t) when this layer is hot."""
    z_t, ld = _coupling_pallas(x.T, c.T, packed, block_b)
    return z_t.T, jnp.squeeze(ld, axis=0)


def reference_forward(x, c, mask, params):
    """Plain-JAX reference mirroring the PyTorch module (unpacked weights)."""
    def leaky(v):
        return jnp.where(v >= 0, v, NEG_SLOPE * v)

    x_fixed = x * (1.0 - mask)
    h = leaky(x_fixed @ params["w1s_x"] + c @ params["w1s_c"] + params["b1s"])
    h = leaky(h @ params["w2s"] + params["b2s"])
    s = h @ params["wos"] + params["bos"]
    g = leaky(x_fixed @ params["w1t_x"] + c @ params["w1t_c"] + params["b1t"])
    g = leaky(g @ params["w2t"] + params["b2t"])
    t = g @ params["wot"] + params["bot"]
    s = s * mask
    t = t * mask
    z = x * jnp.exp(s) + t
    logdet = jnp.sum(s, axis=-1)
    return z, logdet


if __name__ == "__main__":
    B = 8
    in_dim = 16
    condition_dim = 8
    hidden_dim = 32
    mask_reverse = False

    key = jax.random.PRNGKey(0)
    kx, kc, kp = jax.random.split(key, 3)

    x = jax.random.normal(kx, (B, in_dim), jnp.float32)
    c = jax.random.normal(kc, (B, condition_dim), jnp.float32)
    mask = checkerboard_mask1d(in_dim, reverse=mask_reverse)
    params = make_params(kp, in_dim, condition_dim, hidden_dim)

    z_ref, logdet_ref = reference_forward(x, c, mask, params)

    # f32 matmul path (bit-faithful to the reference within f32 tolerance).
    packed_f32 = pack_params(params, mask, matmul_dtype=jnp.float32)
    z, logdet = affine_coupling_forward(x, c, packed_f32)
    jax.block_until_ready((z, logdet))
    assert z.shape == (B, in_dim) and logdet.shape == (B,)
    assert jnp.allclose(z, z_ref, atol=1e-5, rtol=1e-5)
    assert jnp.allclose(logdet, logdet_ref, atol=1e-5, rtol=1e-5)

    # Native transposed (lane-dense) API.
    z_t, logdet_t = affine_coupling_forward_t(x.T, c.T, packed_f32)
    jax.block_until_ready((z_t, logdet_t))
    assert jnp.allclose(z_t.T, z_ref, atol=1e-5, rtol=1e-5)
    assert jnp.allclose(logdet_t, logdet_ref, atol=1e-5, rtol=1e-5)

    # bf16 matmul weights (recommended on all generations): f32 accumulate +
    # f32 elementwise epilogue.  exp() amplifies s error -> loose tolerance.
    packed_bf16 = pack_params(params, mask)   # default bf16
    z16, logdet16 = affine_coupling_forward(x, c, packed_bf16)
    jax.block_until_ready((z16, logdet16))
    assert jnp.allclose(z16, z_ref, atol=2e-1, rtol=2e-1)
    assert jnp.allclose(logdet16, logdet_ref, atol=2e-1, rtol=2e-1)

    # Larger batch to exercise the multi-step (>=2) tiled grid / masked last block.
    B2 = 384
    kx2, kc2 = jax.random.split(jax.random.PRNGKey(1))
    x2 = jax.random.normal(kx2, (B2, in_dim), jnp.float32)
    c2 = jax.random.normal(kc2, (B2, condition_dim), jnp.float32)
    z2_ref, logdet2_ref = reference_forward(x2, c2, mask, params)
    z2, logdet2 = affine_coupling_forward(x2, c2, packed_f32)
    jax.block_until_ready((z2, logdet2))
    assert jnp.allclose(z2, z2_ref, atol=1e-5, rtol=1e-5)
    assert jnp.allclose(logdet2, logdet2_ref, atol=1e-5, rtol=1e-5)

    print("KERNEL_OK")
</pallas_src>

<mosaic_0001>
module attributes {stable_mosaic.version = 11 : i64} {
  func.func @affine_coupling_kernel(%arg0: i32, %arg1: memref<16x8xf32, #tpu.memory_space<vmem>>, %arg2: memref<8x8xf32, #tpu.memory_space<vmem>>, %arg3: memref<64x16xf32, #tpu.memory_space<vmem>>, %arg4: memref<64x8xf32, #tpu.memory_space<vmem>>, %arg5: memref<64x1xf32, #tpu.memory_space<vmem>>, %arg6: memref<64x64xf32, #tpu.memory_space<vmem>>, %arg7: memref<64x1xf32, #tpu.memory_space<vmem>>, %arg8: memref<32x64xf32, #tpu.memory_space<vmem>>, %arg9: memref<32x1xf32, #tpu.memory_space<vmem>>, %arg10: memref<16x8xf32, #tpu.memory_space<vmem>>, %arg11: memref<1x8xf32, #tpu.memory_space<vmem>>) attributes {dimension_semantics = [#tpu.dimension_semantics<parallel>], iteration_bounds = array<i64: 1>, scalar_prefetch = 0 : i64, scratch_operands = 0 : i64, tpu.core_type = #tpu.core_type<tc>, window_params = [{transform_indices = @transform_0, window_bounds = array<i64: 16, 8>}, {transform_indices = @transform_1, window_bounds = array<i64: 8, 8>}, {pipeline_mode = #tpu.pipeline_mode<synchronous>, transform_indices = @transform_2, window_bounds = array<i64: 64, 16>}, {pipeline_mode = #tpu.pipeline_mode<synchronous>, transform_indices = @transform_3, window_bounds = array<i64: 64, 8>}, {pipeline_mode = #tpu.pipeline_mode<synchronous>, transform_indices = @transform_4, window_bounds = array<i64: 64, 1>}, {pipeline_mode = #tpu.pipeline_mode<synchronous>, transform_indices = @transform_5, window_bounds = array<i64: 64, 64>}, {pipeline_mode = #tpu.pipeline_mode<synchronous>, transform_indices = @transform_6, window_bounds = array<i64: 64, 1>}, {pipeline_mode = #tpu.pipeline_mode<synchronous>, transform_indices = @transform_7, window_bounds = array<i64: 32, 64>}, {pipeline_mode = #tpu.pipeline_mode<synchronous>, transform_indices = @transform_8, window_bounds = array<i64: 32, 1>}, {transform_indices = @transform_9, window_bounds = array<i64: 16, 8>}, {transform_indices = @transform_10, window_bounds = array<i64: 1, 8>}]} {
    %c0 = arith.constant 0 : index
    %c0_0 = arith.constant 0 : index
    %0 = vector.load %arg1[%c0, %c0_0] : memref<16x8xf32, #tpu.memory_space<vmem>>, vector<16x8xf32>
    %c0_1 = arith.constant 0 : index
    %c0_2 = arith.constant 0 : index
    %1 = vector.load %arg3[%c0_1, %c0_2] : memref<64x16xf32, #tpu.memory_space<vmem>>, vector<64x16xf32>
    %cst = arith.constant dense<0.000000e+00> : vector<64x8xf32>
    %2 = tpu.matmul %1, %0, %cst {dimension_numbers = #tpu.dot_dimension_numbers<[1], [0], [0], [1], [0, 0, 1, 1], [], []>} : vector<64x16xf32>, vector<16x8xf32>, vector<64x8xf32> -> vector<64x8xf32>
    %c0_3 = arith.constant 0 : index
    %c0_4 = arith.constant 0 : index
    %3 = vector.load %arg4[%c0_3, %c0_4] : memref<64x8xf32, #tpu.memory_space<vmem>>, vector<64x8xf32>
    %c0_5 = arith.constant 0 : index
    %c0_6 = arith.constant 0 : index
    %4 = vector.load %arg2[%c0_5, %c0_6] : memref<8x8xf32, #tpu.memory_space<vmem>>, vector<8x8xf32>
    %cst_7 = arith.constant dense<0.000000e+00> : vector<64x8xf32>
    %5 = tpu.matmul %3, %4, %cst_7 {dimension_numbers = #tpu.dot_dimension_numbers<[1], [0], [0], [1], [0, 0, 1, 1], [], []>} : vector<64x8xf32>, vector<8x8xf32>, vector<64x8xf32> -> vector<64x8xf32>
    %6 = arith.addf %2, %5 : vector<64x8xf32>
    %c0_8 = arith.constant 0 : index
    %c0_9 = arith.constant 0 : index
    %7 = vector.load %arg5[%c0_8, %c0_9] : memref<64x1xf32, #tpu.memory_space<vmem>>, vector<64x1xf32>
    %8 = vector.broadcast %7 : vector<64x1xf32> to vector<64x8xf32>
    %9 = arith.addf %6, %8 : vector<64x8xf32>
    %cst_10 = arith.constant 0.00999999977 : f32
    %10 = vector.broadcast %cst_10 : f32 to vector<64x8xf32>
    %11 = arith.mulf %10, %9 : vector<64x8xf32>
    %12 = arith.maximumf %9, %11 : vector<64x8xf32>
    %c0_11 = arith.constant 0 : index
    %c0_12 = arith.constant 0 : index
    %13 = vector.load %arg6[%c0_11, %c0_12] : memref<64x64xf32, #tpu.memory_space<vmem>>, vector<64x64xf32>
    %cst_13 = arith.constant dense<0.000000e+00> : vector<64x8xf32>
    %14 = tpu.matmul %13, %12, %cst_13 {dimension_numbers = #tpu.dot_dimension_numbers<[1], [0], [0], [1], [0, 0, 1, 1], [], []>} : vector<64x64xf32>, vector<64x8xf32>, vector<64x8xf32> -> vector<64x8xf32>
    %c0_14 = arith.constant 0 : index
    %c0_15 = arith.constant 0 : index
    %15 = vector.load %arg7[%c0_14, %c0_15] : memref<64x1xf32, #tpu.memory_space<vmem>>, vector<64x1xf32>
    %16 = vector.broadcast %15 : vector<64x1xf32> to vector<64x8xf32>
    %17 = arith.addf %14, %16 : vector<64x8xf32>
    %cst_16 = arith.constant 0.00999999977 : f32
    %18 = vector.broadcast %cst_16 : f32 to vector<64x8xf32>
    %19 = arith.mulf %18, %17 : vector<64x8xf32>
    %20 = arith.maximumf %17, %19 : vector<64x8xf32>
    %c0_17 = arith.constant 0 : index
    %c0_18 = arith.constant 0 : index
    %21 = vector.load %arg8[%c0_17, %c0_18] : memref<32x64xf32, #tpu.memory_space<vmem>>, vector<32x64xf32>
    %cst_19 = arith.constant dense<0.000000e+00> : vector<32x8xf32>
    %22 = tpu.matmul %21, %20, %cst_19 {dimension_numbers = #tpu.dot_dimension_numbers<[1], [0], [0], [1], [0, 0, 1, 1], [], []>} : vector<32x64xf32>, vector<64x8xf32>, vector<32x8xf32> -> vector<32x8xf32>
    %c0_20 = arith.constant 0 : index
    %c0_21 = arith.constant 0 : index
    %23 = vector.load %arg9[%c0_20, %c0_21] : memref<32x1xf32, #tpu.memory_space<vmem>>, vector<32x1xf32>
    %24 = vector.broadcast %23 : vector<32x1xf32> to vector<32x8xf32>
    %25 = arith.addf %22, %24 : vector<32x8xf32>
    %26 = vector.extract_strided_slice %25 {offsets = [0, 0], sizes = [16, 8], strides = [1, 1]} : vector<32x8xf32> to vector<16x8xf32>
    %27 = vector.extract_strided_slice %25 {offsets = [16, 0], sizes = [16, 8], strides = [1, 1]} : vector<32x8xf32> to vector<16x8xf32>
    %28 = math.exp %26 : vector<16x8xf32>
    %29 = arith.mulf %0, %28 : vector<16x8xf32>
    %30 = arith.addf %29, %27 : vector<16x8xf32>
    %c0_22 = arith.constant 0 : index
    %c0_23 = arith.constant 0 : index
    %31 = vector.load %arg10[%c0_22, %c0_23] : memref<16x8xf32, #tpu.memory_space<vmem>>, vector<16x8xf32>
    tpu.vector_store %arg10[%c0_22, %c0_23], %30 {strides = array<i32>} : memref<16x8xf32, #tpu.memory_space<vmem>>, vector<16x8xf32>,
    %cst_24 = arith.constant dense<0.000000e+00> : vector<8xf32>
    %32 = vector.multi_reduction <add>, %26, %cst_24 [0] : vector<16x8xf32> to vector<8xf32>
    %33 = vector.shape_cast %32 : vector<8xf32> to vector<1x8xf32>
    %c0_25 = arith.constant 0 : index
    %c0_26 = arith.constant 0 : index
    %34 = vector.load %arg11[%c0_25, %c0_26] : memref<1x8xf32, #tpu.memory_space<vmem>>, vector<1x8xf32>
    tpu.vector_store %arg11[%c0_25, %c0_26], %33 {strides = array<i32>} : memref<1x8xf32, #tpu.memory_space<vmem>>, vector<1x8xf32>,
    return
  }
  func.func @transform_0(%arg0: i32) -> (i32, i32) {
    %c0_i32 = arith.constant 0 : i32
    %c0_i32_0 = arith.constant 0 : i32
    return %c0_i32, %arg0 : i32, i32
  }
  func.func @transform_1(%arg0: i32) -> (i32, i32) {
    %c0_i32 = arith.constant 0 : i32
    %c0_i32_0 = arith.constant 0 : i32
    return %c0_i32, %arg0 : i32, i32
  }
  func.func @transform_2(%arg0: i32) -> (i32, i32) {
    %c0_i32 = arith.constant 0 : i32
    %c0_i32_0 = arith.constant 0 : i32
    %c0_i32_1 = arith.constant 0 : i32
    return %c0_i32, %c0_i32_0 : i32, i32
  }
  func.func @transform_3(%arg0: i32) -> (i32, i32) {
    %c0_i32 = arith.constant 0 : i32
    %c0_i32_0 = arith.constant 0 : i32
    %c0_i32_1 = arith.constant 0 : i32
    return %c0_i32, %c0_i32_0 : i32, i32
  }
  func.func @transform_4(%arg0: i32) -> (i32, i32) {
    %c0_i32 = arith.constant 0 : i32
    %c0_i32_0 = arith.constant 0 : i32
    %c0_i32_1 = arith.constant 0 : i32
    return %c0_i32, %c0_i32_0 : i32, i32
  }
  func.func @transform_5(%arg0: i32) -> (i32, i32) {
    %c0_i32 = arith.constant 0 : i32
    %c0_i32_0 = arith.constant 0 : i32
    %c0_i32_1 = arith.constant 0 : i32
    return %c0_i32, %c0_i32_0 : i32, i32
  }
  func.func @transform_6(%arg0: i32) -> (i32, i32) {
    %c0_i32 = arith.constant 0 : i32
    %c0_i32_0 = arith.constant 0 : i32
    %c0_i32_1 = arith.constant 0 : i32
    return %c0_i32, %c0_i32_0 : i32, i32
  }
  func.func @transform_7(%arg0: i32) -> (i32, i32) {
    %c0_i32 = arith.constant 0 : i32
    %c0_i32_0 = arith.constant 0 : i32
    %c0_i32_1 = arith.constant 0 : i32
    return %c0_i32, %c0_i32_0 : i32, i32
  }
  func.func @transform_8(%arg0: i32) -> (i32, i32) {
    %c0_i32 = arith.constant 0 : i32
    %c0_i32_0 = arith.constant 0 : i32
    %c0_i32_1 = arith.constant 0 : i32
    return %c0_i32, %c0_i32_0 : i32, i32
  }
  func.func @transform_9(%arg0: i32) -> (i32, i32) {
    %c0_i32 = arith.constant 0 : i32
    %c0_i32_0 = arith.constant 0 : i32
    return %c0_i32, %arg0 : i32, i32
  }
  func.func @transform_10(%arg0: i32) -> (i32, i32) {
    %c0_i32 = arith.constant 0 : i32
    %c0_i32_0 = arith.constant 0 : i32
    return %c0_i32, %arg0 : i32, i32
  }
}

</mosaic_0001>

<bundles_post_ra>
// kernel: affine_coupling_forward.1
= control target key start
LH: loop header
LB: loop body
LE: loop exit
PB: predicated region body
PF: predicated region fallthrough
CT: control target
= control target key end

     0   :  { %vm54_vm0 = vcmask 64512   ;;  %vm184_vm1 = vcmask 130048   ;;  %v937_v11 = vmov 0   ;;  %s1198_s0 = inlined_call_operand.vmem [shape: f32[16,8], index: 0, kind: input, shape index: {}]   ;;  %s1199_s1 = inlined_call_operand.vmem [shape: f32[8,8], index: 1, kind: input, shape index: {}]   ;;  %s1200_s2 = inlined_call_operand.vmem [shape: f32[64,16], index: 2, kind: input, shape index: {}]   ;;  %s1201_s3 = inlined_call_operand.vmem [shape: f32[64,8], index: 3, kind: input, shape index: {}]   ;;  %s1202_s4 = inlined_call_operand.vmem [shape: f32[64,1], index: 4, kind: input, shape index: {}]   ;;  %s1203_s5 = inlined_call_operand.vmem [shape: f32[64,64], index: 5, kind: input, shape index: {}]   ;;  %s1204_s6 = inlined_call_operand.vmem [shape: f32[64,1], index: 6, kind: input, shape index: {}]   ;;  %s1205_s7 = inlined_call_operand.vmem [shape: f32[32,64], index: 7, kind: input, shape index: {}]   ;;  %s1206_s8 = inlined_call_operand.vmem [shape: f32[32,1], index: 8, kind: input, shape index: {}]   ;;  %s1207_s9 = inlined_call_operand.vmem [shape: f32[16,8], index: 9, kind: output, shape index: {0}]   ;;  %s1208_s10 = inlined_call_operand.hbm [shape: f32[1,8], index: 10, kind: output, shape index: {1}]  }
   0x1   :  { %v53_v0 = vld [vmem:[%s1199_s1] sm:$0xff]  ;;  %v1000_v1 = vld [vmem:[%s1198_s0 + $0x8] sm:$0xff]  ;;  %v47_v6 = vld [vmem:[%s1201_s3 + $0x10] sm:$0xff]  ;;  %909 = vset.pattern.permute.xlu0 %v937_v11  ;;  %910 = vset.pattern.permute.xlu1 %v937_v11 }
   0x2   :  { %v45_v2 = vld [vmem:[%s1201_s3] sm:$0xff]  ;;  %827 = vmatprep.subr.mxu0 %v53_v0  ;;  %841 = vmatprep.subr.mxu1 %v1000_v1  ;;  %v46_v3 = vld [vmem:[%s1201_s3 + $0x8] sm:$0xff]  ;;  %v48_v8 = vld [vmem:[%s1201_s3 + $0x18] sm:$0xff] }
   0x3   :  { %v1012_v4 = vld [vmem:[%s1198_s0] sm:$0xff]  ;;  %828 = vmatpush3.msra.mxu0 %v53_v0  ;;  %829 = vmatprep.mubr.msk.f32.mxu0 %vm54_vm0, %v45_v2  ;;  %v38_v7 = vld [vmem:[%s1200_s2 + $0x8] sm:$0xff]  ;;  %v39_v9 = vld [vmem:[%s1200_s2 + $0x10] sm:$0xff] }
   0x4   :  { %v37_v5 = vld [vmem:[%s1200_s2] sm:$0xff]  ;;  %842 = vmatpush3.msra.mxu1 %v1000_v1  ;;  %830 = vmatmul.mubr.msk.f32.vlgmr.msra.gmra.mxu0 %vm54_vm0, %v46_v3  ;;  %v321_v12 = vld [vmem:[%s1202_s4 + $0x38] sm:$0xff]  ;;  %v319_v14 = vld [vmem:[%s1202_s4 + $0x28] sm:$0xff] }
   0x5   :  { %843 = vmatprep.subr.mxu1 %v1012_v4  ;;  %845 = vmatprep.mubr.msk.f32.mxu1 %vm184_vm1, %v37_v5  ;;  %v49_v10 = vld [vmem:[%s1201_s3 + $0x20] sm:$0xff]  ;;  %v40_v13 = vld [vmem:[%s1200_s2 + $0x18] sm:$0xff]  ;;  %v50_v15 = vld [vmem:[%s1201_s3 + $0x28] sm:$0xff] }
   0x6   :  { %844 = vmatpush3.msra.mxu1 %v1012_v4  ;;  %832 = vmatprep.mubr.msk.f32.mxu0 %vm54_vm0, %v47_v6  ;;  %v41_v16 = vld [vmem:[%s1200_s2 + $0x20] sm:$0xff]  ;;  %v51_v17 = vld [vmem:[%s1201_s3 + $0x30] sm:$0xff]  ;;  %v42_v19 = vld [vmem:[%s1200_s2 + $0x28] sm:$0xff] }
   0x7   :  { %846 = vmatmul.mubr.msk.f32.vlgmr.msra.gmra.mxu1 %vm184_vm1, %v38_v7  ;;  %359 = vperm.xlu0 %909, %v321_v12   ;;  %v320_v18 = vld [vmem:[%s1202_s4 + $0x30] sm:$0xff]  ;;  %v318_v20 = vld [vmem:[%s1202_s4 + $0x20] sm:$0xff]  ;;  %v52_v21 = vld [vmem:[%s1201_s3 + $0x38] sm:$0xff] }
   0x8   :  { %833 = vmatmul.mubr.msk.f32.gmra.mxu0 %vm54_vm0, %v48_v8  ;;  %848 = vmatprep.mubr.msk.f32.mxu1 %vm184_vm1, %v39_v9  ;;  %v43_v22 = vld [vmem:[%s1200_s2 + $0x30] sm:$0xff]  ;;  %v317_v23 = vld [vmem:[%s1202_s4 + $0x18] sm:$0xff] }
   0x9   :  { %835 = vmatprep.mubr.msk.f32.mxu0 %vm54_vm0, %v49_v10  ;;  %349 = vperm.xlu1 %910, %v319_v14  }
   0xb   :  { %849 = vmatmul.mubr.msk.f32.gmra.mxu1 %vm184_vm1, %v40_v13  ;;  %354 = vperm.xlu0 %909, %v320_v18  }
   0xc   :  { %836 = vmatmul.mubr.msk.f32.gmra.mxu0 %vm54_vm0, %v50_v15  ;;  %851 = vmatprep.mubr.msk.f32.mxu1 %vm184_vm1, %v41_v16 }
   0xd   :  { %838 = vmatprep.mubr.msk.f32.mxu0 %vm54_vm0, %v51_v17 }
   0xe   :  { %16 = vsyncpa [#allocation3], 0  ;;  %344 = vperm.xlu1 %910, %v318_v20   ;;  %v44_v24 = vld [vmem:[%s1200_s2 + $0x38] sm:$0xff]  ;;  %v316_v25 = vld [vmem:[%s1202_s4 + $0x10] sm:$0xff]  ;;  %vm442_vm2 = vcmask 523264   ;;  %vm732_vm3 = vcmask 57344  }
   0xf   :  { %852 = vmatmul.mubr.msk.f32.gmra.mxu1 %vm184_vm1, %v42_v19  ;;  %339 = vperm.xlu0 %909, %v317_v23   ;;  %v315_v26 = vld [vmem:[%s1202_s4 + $0x8] sm:$0xff]  ;;  %v314_v27 = vld [vmem:[%s1202_s4] sm:$0xff]  ;;  %v401_v28 = vld [vmem:[%s1204_s6 + $0x38] sm:$0xff] }
  0x10   :  { %839 = vmatmul.mubr.msk.f32.gmra.mxu0 %vm54_vm0, %v52_v21  ;;  %854 = vmatprep.mubr.msk.f32.mxu1 %vm184_vm1, %v43_v22  ;;  %v400_v29 = vld [vmem:[%s1204_s6 + $0x30] sm:$0xff]  ;;  %v399_v30 = vld [vmem:[%s1204_s6 + $0x28] sm:$0xff]  ;;  %v398_v31 = vld [vmem:[%s1204_s6 + $0x20] sm:$0xff] }
  0x11   :  { %v397_v32 = vld [vmem:[%s1204_s6 + $0x18] sm:$0xff]  ;;  %v396_v33 = vld [vmem:[%s1204_s6 + $0x10] sm:$0xff]  ;;  %v395_v34 = vld [vmem:[%s1204_s6 + $0x8] sm:$0xff] }
  0x12   :  { %334 = vperm.xlu1 %910, %v316_v25   ;;  %v394_v35 = vld [vmem:[%s1204_s6] sm:$0xff]  ;;  %v593_v37 = vld [vmem:[%s1206_s8 + $0x8] sm:$0xff]  ;;  %v594_v38 = vld [vmem:[%s1206_s8 + $0x10] sm:$0xff] }
  0x13   :  { %855 = vmatmul.mubr.msk.f32.gmra.mxu1 %vm184_vm1, %v44_v24  ;;  %329 = vperm.xlu0 %909, %v315_v26   ;;  %v592_v36 = vld [vmem:[%s1206_s8] sm:$0xff]  ;;  %v595_v39 = vld [vmem:[%s1206_s8 + $0x18] sm:$0xff] }
  0x14   :  { %v386_v40 = vld [vmem:[%s1203_s5] sm:$0xff] }
  0x15   :  { %873 = vmatprep.mubr.msk.f32.mxu0 %vm442_vm2, %v386_v40  ;;  %v392_v40 = vld [vmem:[%s1203_s5 + $0x30] sm:$0xff] }
  0x16   :  { %324 = vperm.xlu1 %910, %v314_v27  }
  0x17   :  { %439 = vperm.xlu0 %909, %v401_v28  }
  0x1a   :  { %434 = vperm.xlu1 %910, %v400_v29  }
  0x1b   :  { %429 = vperm.xlu0 %909, %v399_v30  }
  0x1e   :  { %424 = vperm.xlu1 %910, %v398_v31  }
  0x1f   :  { %419 = vperm.xlu0 %909, %v397_v32  }
  0x22   :  { %414 = vperm.xlu1 %910, %v396_v33  }
  0x23   :  { %409 = vperm.xlu0 %909, %v395_v34  }
  0x26   :  { %404 = vperm.xlu1 %910, %v394_v35   ;;  %v387_v35 = vld [vmem:[%s1203_s5 + $0x8] sm:$0xff] }
  0x27   :  { %598 = vperm.xlu0 %909, %v592_v36   ;;  %v388_v36 = vld [vmem:[%s1203_s5 + $0x10] sm:$0xff] }
  0x2a   :  { %603 = vperm.xlu1 %910, %v593_v37   ;;  %v389_v37 = vld [vmem:[%s1203_s5 + $0x18] sm:$0xff] }
  0x2b   :  { %608 = vperm.xlu0 %909, %v594_v38   ;;  %v390_v38 = vld [vmem:[%s1203_s5 + $0x20] sm:$0xff] }
  0x2e   :  { %613 = vperm.xlu1 %910, %v595_v39   ;;  %v391_v39 = vld [vmem:[%s1203_s5 + $0x28] sm:$0xff] }
  0x82   :  { %v360_v46 = vpop.permute.xlu0 %359 }
  0x84   :  { %v350_v50 = vpop.permute.xlu1 %349 }
  0x86   :  { %v355_v54 = vpop.permute.xlu0 %354 }
  0x89   :  { %v345_v58 = vpop.permute.xlu1 %344 }
  0x8a   :  { %v340_v6 = vpop.permute.xlu0 %339 }
  0x8d   :  { %v335_v11 = vpop.permute.xlu1 %334 }
  0x8e   :  { %v330_v21 = vpop.permute.xlu0 %329 }
  0x91   :  { %v325_v25 = vpop.permute.xlu1 %324 }
  0xc4   :  { %v831_v41 = vpop.f32.mrf.mxu0 }
  0xc6   :  { %v145_v42 = vpop.f32.mrf.mxu0 }
  0xc7   :  { %v847_v43 = vpop.f32.mrf.mxu1 }
  0xc8   :  { %v834_v44 = vpop.f32.mrf.mxu0  ;;  %v281_v12 = vadd.f32 %v847_v43, %v831_v41  ;;  %v393_v41 = vld [vmem:[%s1203_s5 + $0x38] sm:$0xff] }
  0xc9   :  { %v275_v45 = vpop.f32.mrf.mxu1 }
  0xca   :  { %v155_v47 = vpop.f32.mrf.mxu0  ;;  %v276_v17 = vadd.f32 %v275_v45, %v145_v42  ;;  %v363_v22 = vadd.f32 %v330_v21, %v281_v12  ;;  %v588_v42 = vld [vmem:[%s1205_s7] sm:$0xff]  ;;  %v589_v21 = vld [vmem:[%s1205_s7 + $0x8] sm:$0xff] }
  0xcb   :  { %v850_v48 = vpop.f32.mrf.mxu1  ;;  %901 = vmatprep.mubr.msk.f32.mxu1 %vm442_vm2, %v588_v42 }
  0xcc   :  { %v837_v49 = vpop.f32.mrf.mxu0  ;;  %v291_v0 = vadd.f32 %v850_v48, %v834_v44  ;;  %v362_v26 = vadd.f32 %v325_v25, %v276_v17  ;;  %v371_v29 = vmul.f32 0.01, %v363_v22  ;;  %v440_v44 = vpop.permute.xlu0 %439 }
  0xcd   :  { %v285_v51 = vpop.f32.mrf.mxu1 }
  0xce   :  { %v165_v52 = vpop.f32.mrf.mxu0  ;;  %v286_v7 = vadd.f32 %v285_v51, %v155_v47  ;;  %v365_v13 = vadd.f32 %v340_v6, %v291_v0  ;;  %v370_v31 = vmul.f32 0.01, %v362_v26  ;;  %v379_v33 = vmax.f32 %v363_v22, %v371_v29  ;;  %v590_v22 = vld [vmem:[%s1205_s7 + $0x10] sm:$0xff] }
  0xcf   :  { %v853_v53 = vpop.f32.mrf.mxu1 }
  0xd0   :  { %v840_v55 = vpop.f32.mrf.mxu0  ;;  %v301_v57 = vadd.f32 %v853_v53, %v837_v49  ;;  %v364_v18 = vadd.f32 %v335_v11, %v286_v7  ;;  %v373_v23 = vmul.f32 0.01, %v365_v13  ;;  %v378_v34 = vmax.f32 %v362_v26, %v370_v31  ;;  %v430_v49 = vpop.permute.xlu0 %429 }
  0xd1   :  { %v295_v56 = vpop.f32.mrf.mxu1 }
  0xd2   :  { %v296_v60 = vadd.f32 %v295_v56, %v165_v52  ;;  %v175_v62 = vpop.f32.mrf.mxu0  ;;  %v367_v2 = vadd.f32 %v350_v50, %v301_v57  ;;  %v372_v27 = vmul.f32 0.01, %v364_v18  ;;  %v381_v30 = vmax.f32 %v365_v13, %v373_v23  ;;  %v591_v23 = vld [vmem:[%s1205_s7 + $0x18] sm:$0xff]  ;;  %s938_s7 = smov [#allocation2]  }
  0xd3   :  { %v856_v59 = vpop.f32.mrf.mxu1  ;;  %s742_s17 = sshll.u32 %s938_s7, 4  ;;  %s743_s17 = int_to_ptr.vmem [resolvable:$true] %s742_s17 }
  0xd4   :  { %v311_v61 = vadd.f32 %v856_v59, %v840_v55  ;;  %v366_v8 = vadd.f32 %v345_v58, %v296_v60  ;;  %v375_v14 = vmul.f32 0.01, %v367_v2  ;;  %v380_v32 = vmax.f32 %v364_v18, %v372_v27  ;;  %v420_v56 = vpop.permute.xlu0 %419  ;;  %s915_s18 = scalar_lea.vmem %s743_s17, 16  ;;  %s919_s19 = scalar_lea.vmem %s743_s17, 32 }
  0xd5   :  { %v305_v63 = vpop.f32.mrf.mxu1  ;;  %p916_p0 = scmp.ne.s32.totalorder %s743_s17, %s915_s18  ;;  %p920_p1 = scmp.lt.s32.totalorder %s743_s17, %s743_s17 }
  0xd6   :  { %v369_v3 = vadd.f32 %v360_v46, %v311_v61  ;;  %v306_v5 = vadd.f32 %v305_v63, %v175_v62  ;;  %v374_v19 = vmul.f32 0.01, %v366_v8  ;;  %v383_v24 = vmax.f32 %v367_v2, %v375_v14  ;;  %v435_v46 = vpop.permute.xlu1 %434  ;;  %p921_p2 = scmp.lt.s32.totalorder %s919_s19, %s915_s18 }
  0xd8   :  { %v377_v9 = vmul.f32 0.01, %v369_v3  ;;  %v368_v10 = vadd.f32 %v355_v54, %v306_v5  ;;  %v382_v28 = vmax.f32 %v366_v8, %v374_v19  ;;  %v410_v7 = vpop.permute.xlu0 %409  ;;  %p922_p3 = por %p921_p2, %p920_p1 }
  0xda   :  { %v376_v15 = vmul.f32 0.01, %v368_v10  ;;  %v385_v16 = vmax.f32 %v369_v3, %v377_v9  ;;  %v425_v51 = vpop.permute.xlu1 %424  ;;  %p923_p4 = pnand %p922_p3, %p916_p0 }
  0xdc   :  { %857 = vmatprep.subr.mxu0 %v385_v16  ;;  %v384_v20 = vmax.f32 %v368_v10, %v376_v15  ;;  %v599_v27 = vpop.permute.xlu0 %598 }
  0xdd   :  { %858 = vmatpush3.msra.mxu0 %v385_v16 }
  0xde   :  { %859 = vmatprep.subr.mxu0 %v384_v20  ;;  %v415_v61 = vpop.permute.xlu1 %414 }
  0xdf   :  { %860 = vmatpush3.msra.mxu0 %v384_v20 }
  0xe0   :  { %861 = vmatprep.subr.mxu0 %v383_v24 }
  0xe1   :  { %862 = vmatpush3.msra.mxu0 %v383_v24 }
  0xe2   :  { %863 = vmatprep.subr.mxu0 %v382_v28  ;;  %v405_v11 = vpop.permute.xlu1 %404 }
  0xe3   :  { %864 = vmatpush3.msra.mxu0 %v382_v28 }
  0xe4   :  { %865 = vmatprep.subr.mxu0 %v381_v30 }
  0xe5   :  { %866 = vmatpush3.msra.mxu0 %v381_v30 }
  0xe6   :  { %867 = vmatprep.subr.mxu0 %v380_v32  ;;  %v604_v24 = vpop.permute.xlu1 %603 }
  0xe7   :  { %868 = vmatpush3.msra.mxu0 %v380_v32 }
  0xe8   :  { %869 = vmatprep.subr.mxu0 %v379_v33 }
  0xe9   :  { %870 = vmatpush3.msra.mxu0 %v379_v33 }
  0xea   :  { %871 = vmatprep.subr.mxu0 %v378_v34  ;;  %v614_v42 = vpop.permute.xlu1 %613 }
  0xeb   :  { %872 = vmatpush3.msra.mxu0 %v378_v34 }
  0xec   :  { %874 = vmatmul.mubr.msk.f32.vlgmr.msra.gmra.mxu0 %vm442_vm2, %v387_v35 }
  0xed   :  { %876 = vmatprep.mubr.msk.f32.mxu0 %vm442_vm2, %v388_v36 }
  0xf0   :  { %877 = vmatmul.mubr.msk.f32.gmra.mxu0 %vm442_vm2, %v389_v37 }
  0xf1   :  { %879 = vmatprep.mubr.msk.f32.mxu0 %vm442_vm2, %v390_v38 }
  0xf4   :  { %880 = vmatmul.mubr.msk.f32.gmra.mxu0 %vm442_vm2, %v391_v39 }
  0xf5   :  { %882 = vmatprep.mubr.msk.f32.mxu0 %vm442_vm2, %v392_v40 }
  0xf8   :  { %883 = vmatmul.mubr.msk.f32.gmra.mxu0 %vm442_vm2, %v393_v41 }
 0x1ac   :  { %v875_v43 = vpop.f32.mrf.mxu0 }
 0x1ad   :  { %v539_v8 = vadd.f32 %v875_v43, %v410_v7 }
 0x1ae   :  { %v533_v45 = vpop.f32.mrf.mxu0 }
 0x1af   :  { %v534_v12 = vadd.f32 %v533_v45, %v405_v11  ;;  %v573_v15 = vmul.f32 0.01, %v539_v8 }
 0x1b0   :  { %v878_v47 = vpop.f32.mrf.mxu0 }
 0x1b1   :  { %v549_v62 = vadd.f32 %v878_v47, %v420_v56  ;;  %v572_v17 = vmul.f32 0.01, %v534_v12  ;;  %v581_v19 = vmax.f32 %v539_v8, %v573_v15 }
 0x1b2   :  { %v543_v48 = vpop.f32.mrf.mxu0 }
 0x1b3   :  { %v544_v3 = vadd.f32 %v543_v48, %v415_v61  ;;  %v575_v9 = vmul.f32 0.01, %v549_v62  ;;  %v580_v20 = vmax.f32 %v534_v12, %v572_v17  ;;  %v609_v48 = vpop.permute.xlu0 %608 }
 0x1b4   :  { %v881_v50 = vpop.f32.mrf.mxu0 }
 0x1b5   :  { %v559_v54 = vadd.f32 %v881_v50, %v430_v49  ;;  %v574_v13 = vmul.f32 0.01, %v544_v3  ;;  %v583_v16 = vmax.f32 %v549_v62, %v575_v9 }
 0x1b6   :  { %v553_v52 = vpop.f32.mrf.mxu0 }
 0x1b7   :  { %v554_v58 = vadd.f32 %v553_v52, %v425_v51  ;;  %v577_v63 = vmul.f32 0.01, %v559_v54  ;;  %v582_v18 = vmax.f32 %v544_v3, %v574_v13 }
 0x1b8   :  { %v884_v53 = vpop.f32.mrf.mxu0 }
 0x1b9   :  { %v569_v55 = vadd.f32 %v884_v53, %v440_v44  ;;  %v576_v5 = vmul.f32 0.01, %v554_v58  ;;  %v585_v10 = vmax.f32 %v559_v54, %v577_v63 }
 0x1ba   :  { %v563_v57 = vpop.f32.mrf.mxu0 }
 0x1bb   :  { %v579_v59 = vmul.f32 0.01, %v569_v55  ;;  %v564_v60 = vadd.f32 %v563_v57, %v435_v46  ;;  %v584_v14 = vmax.f32 %v554_v58, %v576_v5 }
 0x1bd   :  { %v587_v0 = vmax.f32 %v569_v55, %v579_v59  ;;  %v578_v2 = vmul.f32 0.01, %v564_v60 }
 0x1bf   :  { %v586_v6 = vmax.f32 %v564_v60, %v578_v2  ;;  %885 = vmatprep.subr.mxu1 %v587_v0 }
 0x1c0   :  { %886 = vmatpush3.msra.mxu1 %v587_v0 }
 0x1c1   :  { %887 = vmatprep.subr.mxu1 %v586_v6 }
 0x1c2   :  { %888 = vmatpush3.msra.mxu1 %v586_v6 }
 0x1c3   :  { %889 = vmatprep.subr.mxu1 %v585_v10 }
 0x1c4   :  { %890 = vmatpush3.msra.mxu1 %v585_v10 }
 0x1c5   :  { %891 = vmatprep.subr.mxu1 %v584_v14 }
 0x1c6   :  { %892 = vmatpush3.msra.mxu1 %v584_v14 }
 0x1c7   :  { %893 = vmatprep.subr.mxu1 %v583_v16 }
 0x1c8   :  { %894 = vmatpush3.msra.mxu1 %v583_v16 }
 0x1c9   :  { %895 = vmatprep.subr.mxu1 %v582_v18 }
 0x1ca   :  { %896 = vmatpush3.msra.mxu1 %v582_v18 }
 0x1cb   :  { %897 = vmatprep.subr.mxu1 %v581_v19 }
 0x1cc   :  { %898 = vmatpush3.msra.mxu1 %v581_v19 }
 0x1cd   :  { %899 = vmatprep.subr.mxu1 %v580_v20 }
 0x1ce   :  { %900 = vmatpush3.msra.mxu1 %v580_v20 }
 0x1cf   :  { %902 = vmatmul.mubr.msk.f32.vlgmr.msra.gmra.mxu1 %vm442_vm2, %v589_v21 }
 0x1d0   :  { %904 = vmatprep.mubr.msk.f32.mxu1 %vm442_vm2, %v590_v22 }
 0x1d3   :  { %905 = vmatmul.mubr.msk.f32.gmra.mxu1 %vm442_vm2, %v591_v23 }
 0x28f   :  { %v903_v25 = vpop.f32.mrf.mxu1 }
 0x290   :  { %v700_v26 = vadd.f32 %v903_v25, %v604_v24 }
 0x291   :  { %v694_v28 = vpop.f32.mrf.mxu1 }
 0x292   :  { %v715_v29 = vmul.f32 1.442695, %v700_v26  ;;  %v695_v30 = vadd.f32 %v694_v28, %v599_v27  ;;  %v724_v31 = vsel %vm54_vm0, %v700_v26, 0.0 }
 0x293   :  { %v906_v38 = vpop.f32.mrf.mxu1 }
 0x294   :  { %911 = vpow2.f32 %v715_v29  ;;  %v713_v32 = vmul.f32 1.442695, %v695_v30  ;;  %v723_v33 = vsel %vm54_vm0, %v695_v30, 0.0  ;;  %v710_v45 = vadd.f32 %v906_v38, %v614_v42 }
 0x295   :  { %v725_v34 = vadd.f32 %v724_v31, %v723_v33  ;;  %v704_v43 = vpop.f32.mrf.mxu1 }
 0x296   :  { %913 = vpow2.f32 %v713_v32  ;;  %v705_v50 = vadd.f32 %v704_v43, %v609_v48 }
 0x297   :  { %v726_v35 = vrot.slane %v725_v34, 4 }
 0x299   :  { %v727_v36 = vadd.f32 %v726_v35, %v725_v34 }
 0x29b   :  { %v728_v37 = vrot.slane %v727_v36, 2 }
 0x29d   :  { %v729_v39 = vadd.f32 %v728_v37, %v727_v36 }
 0x29f   :  { %v730_v40 = vrot.slane %v729_v39, 1 }
 0x2a1   :  { %v912_v41 = vpop.eup %911  ;;  %v731_v44 = vadd.f32 %v730_v40, %v729_v39 }
 0x2a2   :  { %v718_v46 = vmul.f32 %v912_v41, %v1000_v1 }
 0x2a3   :  { %v914_v47 = vpop.eup %913  ;;  %733 = vst.msk [vmem:[#allocation2] sm:$0x1] %vm732_vm3, %v731_v44 }
 0x2a4   :  { %v720_v49 = vadd.f32 %v718_v46, %v710_v45  ;;  %v717_v51 = vmul.f32 %v914_v47, %v1012_v4 }
 0x2a5   :  { %926 = shalt.err (!%p923_p4)
}
 0x2a6   :  { %745 = dma.vmem_to_hbm [thread:$0]  %s743_s17, 16, %s1208_s10, [#allocation3]   ;;  %722 = vst.msk [vmem:[%s1207_s9 + $0x8] sm:$0xff] %vm54_vm0, %v720_v49  ;;  %v719_v1 = vadd.f32 %v717_v51, %v705_v50 }
 0x2a8   :  { %721 = vst.msk [vmem:[%s1207_s9] sm:$0xff] %vm54_vm0, %v719_v1 }
 0x2a9   :  { %935 = dma.done.wait [#allocation3], 16  }
 0x2aa   :  { %936 = vsyncadd [#allocation3], 4294967280 }
 0x2ab   :  { %751 = vsyncpa [#allocation3], 1 }

</bundles_post_ra>
